<compile_context>
chip_gen: v7x
topology: tpu7x:2x2x1
jax: 0.10.0
libtpu: 0.0.40
codegen_flags: <defaults>
</compile_context>

<pallas_src>
import jax
import jax.numpy as jnp
from jax import lax
from jax.experimental import pallas as pl
from jax.experimental.pallas import tpu as pltpu


# ----------------------------------------------------------------------------
# VMEM-aware tile selection helpers.
# ----------------------------------------------------------------------------
def _vmem_budget_bytes():
    cap = None
    try:
        info = pltpu.get_tpu_info()
        cap = int(getattr(info, "vmem_capacity_bytes", 0)) or None
    except Exception:
        cap = None
    if cap is None:
        kind = ""
        try:
            kind = jax.devices()[0].device_kind.lower()
        except Exception:
            pass
        if "v7" in kind:
            cap = 64 << 20
        elif "v2" in kind or "v3" in kind:
            cap = 16 << 20
        elif any(g in kind for g in ("v4", "v5", "v6")):
            cap = 128 << 20
        else:
            cap = 64 << 20                       # conservative unknown-target default
    # Leave headroom for compiler-internal scratch.
    limit = min(cap * 3 // 4, cap - (12 << 20))
    return int(max(limit, 16 << 20))


def _padded_block_bytes(shape, dtype):
    """VMEM footprint of a block including (8,128) lane/sublane tile padding."""
    isz = jnp.dtype(dtype).itemsize
    sub = {4: 8, 2: 16, 1: 32}.get(isz, 8)
    s = list(shape)
    if len(s) >= 1:
        s[-1] = -(-s[-1] // 128) * 128
    if len(s) >= 2:
        s[-2] = -(-s[-2] // sub) * sub
    n = 1
    for d in s:
        n *= max(int(d), 1)
    return n * isz


def _pick_h_tile(H, N, bytes_for, budget, *, w, min_grid=4, target_mw=256):
    """Pick an H tile: fits VMEM, prefers >=min_grid grid steps and Ht*W>=target_mw."""
    def fits(ht):
        return bytes_for(ht) <= budget

    divs = [d for d in range(H, 0, -1) if H % d == 0]
    # 1) divisor; fits; enough grid steps (core split / pipelining); slab full.
    for d in divs:
        if fits(d) and N * (H // d) >= min_grid and d * w >= target_mw:
            return d
    # 2) divisor; fits; slab full (prefer MXU/store fill over step count).
    for d in divs:
        if fits(d) and d * w >= target_mw:
            return d
    # 3) non-divisor fallback (caller zero-pads H): largest fitting tile, if it fills.
    best = 1
    for ht in range(1, H + 1):
        if fits(ht):
            best = ht
    if best * w >= target_mw:
        return best
    # 4) largest fitting divisor.
    for d in divs:
        if fits(d):
            return d
    return 1


# ----------------------------------------------------------------------------
# Kernel 1: nearest-neighbour 2x upsample (use_conv=False path).
# Output viewed as (N, H, 2, W, 2C): each source row becomes one (W, 2C) slab
# stored to the two duplicated output rows.
# ----------------------------------------------------------------------------
def _upsample2x_kernel(x_ref, o_ref):
    x = x_ref[...]                                   # (Ht, W, C)
    y = jnp.concatenate([x, x], axis=-1)             # (Ht, W, 2C)
    o_ref[:, 0, :, :] = y
    o_ref[:, 1, :, :] = y


def upsample_nearest_2x(x_nhwc):
    N, H, W, C = x_nhwc.shape
    dt = x_nhwc.dtype
    limit = _vmem_budget_bytes()

    def bytes_for(ht):
        return (2 * _padded_block_bytes((ht, W, C), dt)           # input, dbl-buffered
                + 2 * _padded_block_bytes((ht, 2, W, 2 * C), dt)  # output, dbl-buffered
                + _padded_block_bytes((ht, W, 2 * C), dt))        # concat value

    # Mem-bound path: modest buffers already saturate HBM BW; keep steps for overlap.
    Ht = _pick_h_tile(H, N, bytes_for, min(limit, 8 << 20), w=W)
    T = -(-H // Ht)
    Hp = T * Ht
    xp = x_nhwc if Hp == H else jnp.pad(x_nhwc, ((0, 0), (0, Hp - H), (0, 0), (0, 0)))

    # TODO(synk): for C < 64 a flattened (W*2C) lane-dense output layout would avoid
    # masked stores; current layout is already lane-dense for typical UNet channels.
    out5 = pl.pallas_call(
        _upsample2x_kernel,
        out_shape=jax.ShapeDtypeStruct((N, Hp, 2, W, 2 * C), dt),
        grid_spec=pltpu.PrefetchScalarGridSpec(
            num_scalar_prefetch=0,
            grid=(N, T),
            in_specs=[pl.BlockSpec((None, Ht, W, C), lambda n, t: (n, t, 0, 0))],
            out_specs=pl.BlockSpec((None, Ht, 2, W, 2 * C),
                                   lambda n, t: (n, t, 0, 0, 0)),
        ),
        compiler_params=pltpu.CompilerParams(
            dimension_semantics=("parallel", "parallel"),
            vmem_limit_bytes=limit),
    )(xp)
    out = out5.reshape(N, 2 * Hp, 2 * W, C)           # free view reshape
    if Hp != H:
        out = out[:, :2 * H]
    return out


# ----------------------------------------------------------------------------
# Kernel 2: fused nearest-2x upsample + 3x3 "same" conv (use_conv=True path).
#
# A 3x3 window over the 2x-nearest-upsampled image touches at most 2x2 source
# pixels, so output (row phase a, col phase b) is a 2x2 conv on the ORIGINAL
# input.  Column phases are folded into output channels; per row phase the six
# (row-tap u, col-offset s) taps are folded into one im2col matmul with
# K = 6*Cin:   (Ht*W, 6*Cin) @ (6*Cin, 2*Cout).
# ----------------------------------------------------------------------------
def _fold_upsample_into_conv3x3(w_hwio):
    w = w_hwio.astype(jnp.float32)                    # (3, 3, Cin, Cout) = (ky,kx,ci,co)
    cin, cout = w.shape[2], w.shape[3]
    zeros = jnp.zeros((cin, cout), jnp.float32)
    # Row phase a=0 reads source rows {i-1, i}; a=1 reads {i, i+1}.
    row = [[w[0], w[1] + w[2]],
           [w[0] + w[1], w[2]]]                       # row[a][u]: (3, Cin, Cout) over kx
    phases = []
    for a in range(2):
        taps = []
        for u in range(2):
            m = row[a][u]
            # Col phase b=0 reads source cols {j-1, j}; b=1 reads {j, j+1}.
            taps.append(jnp.stack([
                jnp.concatenate([m[0], zeros], axis=-1),           # s = 0
                jnp.concatenate([m[1] + m[2], m[0] + m[1]], -1),   # s = 1
                jnp.concatenate([zeros, m[2]], axis=-1),           # s = 2
            ], axis=0))                               # (3, Cin, 2*Cout)
        phases.append(jnp.stack(taps, axis=0))        # (2, 3, Cin, 2*Cout)
    # Flatten (u, s, cin) -> K so it matches the kernel's im2col concat order.
    return jnp.stack(phases, axis=0).reshape(2, 6 * cin, 2 * cout)


def _fused_up_conv3x3_kernel(x_ref, up_ref, dn_ref, w_ref, b_ref, o_ref):
    # x_ref : (Ht, W+2, Cin)     W-pre-padded source rows of this tile (compute dtype)
    # up_ref: (1, W+2, Cin)      source row above tile (clamped; masked to 0 at t==0)
    # dn_ref: (1, W+2, Cin)      source row below tile (clamped; masked to 0 at t==T-1)
    # w_ref : (2, 6*Cin, 2*Cout) folded weights per row phase
    # b_ref : (1, 2*Cout)        bias duplicated over the two column phases (f32)
    # o_ref : (Ht, 2, W, 2*Cout) output: row phase on axis 1, col phase in the lanes
    t = pl.program_id(1)
    T = pl.num_programs(1)
    Ht, _, W, co2 = o_ref.shape
    cdt = x_ref.dtype

    x_c = x_ref[...]
    up = up_ref[...] * (t > 0).astype(cdt)            # zero halo at the top boundary
    dn = dn_ref[...] * (t < T - 1).astype(cdt)        # zero halo at the bottom boundary
    xs = jnp.concatenate([up, x_c, dn], axis=0)       # (Ht+2, W+2, Cin), leading-dim only

    bias = b_ref[...]                                 # (1, 2*Cout) f32

    for a in range(2):
        # im2col: 2 row taps x 3 column offsets -> K = 6*Cin, single MXU matmul.
        patches = [xs[a + u:a + u + Ht, s:s + W, :]
                   for u in range(2) for s in range(3)]
        lhs = jnp.concatenate(patches, axis=-1)       # (Ht, W, 6*Cin)
        acc = jnp.dot(lhs.reshape(Ht * W, lhs.shape[-1]), w_ref[a],
                      preferred_element_type=jnp.float32)
        o_ref[:, a, :, :] = (acc + bias).reshape(Ht, W, co2).astype(o_ref.dtype)


def upsample2x_conv3x3(x_nhwc, w_hwio, bias, *, compute_dtype=jnp.bfloat16):
    """Nearest-2x upsample followed by a 3x3 'same' conv, fused in one kernel."""
    N, H, W, cin = x_nhwc.shape
    cout = w_hwio.shape[-1]
    cdt = jnp.dtype(compute_dtype) if compute_dtype is not None else jnp.dtype(x_nhwc.dtype)
    odt = x_nhwc.dtype

    # NOTE: with bf16 compute the pre-summed folded weights and the input are
    # rounded once to bf16; accumulation stays f32 on the MXU.
    wc = _fold_upsample_into_conv3x3(w_hwio).astype(cdt)          # (2, 6*Cin, 2*Cout)
    b2 = jnp.concatenate([bias, bias]).reshape(1, 2 * cout).astype(jnp.float32)

    limit = _vmem_budget_bytes()

    def bytes_for(ht):
        return (2 * _padded_block_bytes((ht, W + 2, cin), cdt)            # center, dbl-buf
                + 2 * _padded_block_bytes((ht, 2, W, 2 * cout), odt)      # output, dbl-buf
                + 4 * _padded_block_bytes((1, W + 2, cin), cdt)           # up/dn halos
                + 2 * _padded_block_bytes((2, 6 * cin, 2 * cout), cdt)    # weights, dbl-buf
                + 2 * _padded_block_bytes((1, 2 * cout), jnp.float32)     # bias
                + _padded_block_bytes((ht + 2, W + 2, cin), cdt)          # assembled tile
                + 2 * _padded_block_bytes((ht * W, 6 * cin), cdt)         # im2col values
                + 2 * _padded_block_bytes((ht * W, 2 * cout), jnp.float32))  # f32 acc

    Ht = _pick_h_tile(H, N, bytes_for, limit, w=W)
    T = -(-H // Ht)
    Hp = T * Ht

    # Single wrapper-side pad: cast to compute dtype, zero-pad W by 1 each side
    # (and H up to a tile multiple if needed) -> no in-kernel padding writes.
    xp = jnp.pad(x_nhwc.astype(cdt), ((0, 0), (0, Hp - H), (1, 1), (0, 0)))

    out5 = pl.pallas_call(
        _fused_up_conv3x3_kernel,
        out_shape=jax.ShapeDtypeStruct((N, Hp, 2, W, 2 * cout), odt),
        grid_spec=pltpu.PrefetchScalarGridSpec(
            num_scalar_prefetch=0,
            grid=(N, T),
            in_specs=[
                pl.BlockSpec((None, Ht, W + 2, cin), lambda n, t: (n, t, 0, 0)),
                pl.BlockSpec((None, 1, W + 2, cin),
                             lambda n, t: (n, jnp.maximum(t * Ht - 1, 0), 0, 0)),
                pl.BlockSpec((None, 1, W + 2, cin),
                             lambda n, t: (n, jnp.minimum(t * Ht + Ht, Hp - 1), 0, 0)),
                # TODO(synk): on v7x single-buffer this constant weight block
                # (pipeline_mode=pl.Buffered(1)) or stage it once from HBM; its
                # double-buffered footprint is already charged in bytes_for().
                pl.BlockSpec((2, 6 * cin, 2 * cout), lambda n, t: (0, 0, 0)),
                pl.BlockSpec((1, 2 * cout), lambda n, t: (0, 0)),
            ],
            out_specs=pl.BlockSpec((None, Ht, 2, W, 2 * cout),
                                   lambda n, t: (n, t, 0, 0, 0)),
        ),
        compiler_params=pltpu.CompilerParams(
            dimension_semantics=("parallel", "parallel"),
            vmem_limit_bytes=limit),
    )(xp, xp, xp, wc, b2)

    out = out5.reshape(N, 2 * Hp, 2 * W, cout)         # free view reshape
    if Hp != H:
        out = out[:, :2 * H]
    return out


# ----------------------------------------------------------------------------
# Module equivalent of the PyTorch Upsample.
# ----------------------------------------------------------------------------
class Upsample:
    def __init__(self, channels, use_conv, key, compute_dtype=jnp.bfloat16):
        self.use_conv = use_conv
        self.compute_dtype = compute_dtype
        if use_conv:
            # Deterministic init (mimics PyTorch Conv2d default fan-in uniform).
            k1, k2 = jax.random.split(key)
            fan_in = channels * 3 * 3
            bound = 1.0 / (fan_in ** 0.5)
            self.w = jax.random.uniform(k1, (3, 3, channels, channels),
                                        jnp.float32, -bound, bound)     # HWIO
            self.b = jax.random.uniform(k2, (channels,), jnp.float32, -bound, bound)

    def __call__(self, x_nchw):
        # TODO(synk): these NCHW<->NHWC transposes are full HBM round-trips; keep the
        # surrounding model in NHWC to avoid them (they dominate the mem-bound path).
        x = jnp.transpose(x_nchw, (0, 2, 3, 1))        # NCHW -> NHWC
        if self.use_conv:
            x = upsample2x_conv3x3(x, self.w, self.b, compute_dtype=self.compute_dtype)
        else:
            x = upsample_nearest_2x(x)
        return jnp.transpose(x, (0, 3, 1, 2))          # NHWC -> NCHW


if __name__ == "__main__":
    key = jax.random.PRNGKey(0)
    kx, kp = jax.random.split(key)

    N, C, H, W = 2, 4, 16, 16
    x = jax.random.normal(kx, (N, C, H, W), jnp.float32)

    # --- use_conv=False path: exact nearest-neighbour duplicate ----------------
    up_only = jax.block_until_ready(Upsample(C, use_conv=False, key=kp)(x))
    ref_up = jnp.repeat(jnp.repeat(x, 2, axis=2), 2, axis=3)
    assert up_only.shape == (N, C, 2 * H, 2 * W)
    assert float(jnp.max(jnp.abs(up_only - ref_up))) == 0.0

    # --- use_conv=True path, f32 compute: tight check vs lax reference ---------
    mod_f32 = Upsample(C, use_conv=True, key=kp, compute_dtype=jnp.float32)
    out_f32 = jax.block_until_ready(mod_f32(x))
    assert out_f32.shape == (N, C, 2 * H, 2 * W)

    ref_up_nhwc = jnp.transpose(ref_up, (0, 2, 3, 1))
    ref_conv_nhwc = lax.conv_general_dilated(
        ref_up_nhwc, mod_f32.w, window_strides=(1, 1), padding="SAME",
        dimension_numbers=("NHWC", "HWIO", "NHWC")) + mod_f32.b
    ref_out = jnp.transpose(ref_conv_nhwc, (0, 3, 1, 2))

    err = float(jnp.max(jnp.abs(out_f32 - ref_out)))
    assert err < 2e-4, f"f32 max abs error {err}"

    # --- use_conv=True path, default bf16 compute (f32 MXU accumulation) -------
    mod_bf16 = Upsample(C, use_conv=True, key=kp)      # default compute_dtype=bf16
    out_bf16 = jax.block_until_ready(mod_bf16(x))
    err_bf16 = float(jnp.max(jnp.abs(out_bf16 - ref_out)))
    assert err_bf16 < 0.1, f"bf16 max abs error {err_bf16}"

    print("KERNEL_OK")
</pallas_src>

<mosaic_0001>
module attributes {stable_mosaic.version = 11 : i64} {
  func.func @_upsample2x_kernel(%arg0: i32, %arg1: i32, %arg2: memref<1x16x16x4xf32, #tpu.memory_space<vmem>>, %arg3: memref<1x16x2x16x8xf32, #tpu.memory_space<vmem>>) attributes {dimension_semantics = [#tpu.dimension_semantics<parallel>, #tpu.dimension_semantics<parallel>], iteration_bounds = array<i64: 2, 1>, scalar_prefetch = 0 : i64, scratch_operands = 0 : i64, tpu.core_type = #tpu.core_type<tc>, window_params = [{transform_indices = @transform_0, window_bounds = array<i64: 1, 16, 16, 4>}, {transform_indices = @transform_1, window_bounds = array<i64: 1, 16, 2, 16, 8>}]} {
    %c0 = arith.constant 0 : index
    %c0_0 = arith.constant 0 : index
    %c0_1 = arith.constant 0 : index
    %c0_2 = arith.constant 0 : index
    %0 = vector.load %arg2[%c0, %c0_0, %c0_1, %c0_2] : memref<1x16x16x4xf32, #tpu.memory_space<vmem>>, vector<1x16x16x4xf32>
    %1 = vector.shape_cast %0 : vector<1x16x16x4xf32> to vector<16x16x4xf32>
    %2 = tpu.concatenate %1, %1 in 2 : vector<16x16x4xf32>, vector<16x16x4xf32> -> vector<16x16x8xf32>
    %c0_3 = arith.constant 0 : index
    %c0_4 = arith.constant 0 : index
    %c0_5 = arith.constant 0 : index
    %c0_6 = arith.constant 0 : index
    %c0_7 = arith.constant 0 : index
    %3 = vector.load %arg3[%c0_3, %c0_4, %c0_5, %c0_6, %c0_7] : memref<1x16x2x16x8xf32, #tpu.memory_space<vmem>>, vector<1x16x1x16x8xf32>
    %4 = vector.shape_cast %3 : vector<1x16x1x16x8xf32> to vector<16x16x8xf32>
    %5 = vector.shape_cast %2 : vector<16x16x8xf32> to vector<1x16x1x16x8xf32>
    tpu.vector_store %arg3[%c0_3, %c0_4, %c0_5, %c0_6, %c0_7], %5 {strides = array<i32>} : memref<1x16x2x16x8xf32, #tpu.memory_space<vmem>>, vector<1x16x1x16x8xf32>,
    %c0_8 = arith.constant 0 : index
    %c0_9 = arith.constant 0 : index
    %c1 = arith.constant 1 : index
    %c0_10 = arith.constant 0 : index
    %c0_11 = arith.constant 0 : index
    %6 = vector.load %arg3[%c0_8, %c0_9, %c1, %c0_10, %c0_11] : memref<1x16x2x16x8xf32, #tpu.memory_space<vmem>>, vector<1x16x1x16x8xf32>
    %7 = vector.shape_cast %6 : vector<1x16x1x16x8xf32> to vector<16x16x8xf32>
    %8 = vector.shape_cast %2 : vector<16x16x8xf32> to vector<1x16x1x16x8xf32>
    tpu.vector_store %arg3[%c0_8, %c0_9, %c1, %c0_10, %c0_11], %8 {strides = array<i32>} : memref<1x16x2x16x8xf32, #tpu.memory_space<vmem>>, vector<1x16x1x16x8xf32>,
    return
  }
  func.func @transform_0(%arg0: i32, %arg1: i32) -> (i32, i32, i32, i32) {
    %c0_i32 = arith.constant 0 : i32
    %c0_i32_0 = arith.constant 0 : i32
    %c0_i32_1 = arith.constant 0 : i32
    return %arg0, %arg1, %c0_i32, %c0_i32_0 : i32, i32, i32, i32
  }
  func.func @transform_1(%arg0: i32, %arg1: i32) -> (i32, i32, i32, i32, i32) {
    %c0_i32 = arith.constant 0 : i32
    %c0_i32_0 = arith.constant 0 : i32
    %c0_i32_1 = arith.constant 0 : i32
    %c0_i32_2 = arith.constant 0 : i32
    return %arg0, %arg1, %c0_i32, %c0_i32_0, %c0_i32_1 : i32, i32, i32, i32, i32
  }
}

</mosaic_0001>

<bundles_post_ra>
// kernel: tpu_custom_call.1
= control target key start
LH: loop header
LB: loop body
LE: loop exit
PB: predicated region body
PF: predicated region fallthrough
CT: control target
= control target key end

     0   :  { %s621_s6 = smov 0   ;;  %s623_s7 = smov 0   ;;  %s1014_s0 = inlined_call_operand.vmem [shape: f32[2,16,16,4], index: 0, kind: input, shape index: {}]   ;;  %s1015_s1 = inlined_call_operand.vmem [shape: f32[2,16,2,16,8], index: 1, kind: output, shape index: {}]  }
   0x1   :  { %s625_s8 = smov 0  }
   0x2 LB: > { %s23_s9 = sadd.s32 1, %s604_s7  ;;  %p520_p0 = scmp.ge.s32.totalorder %s608_s8, 1  ;;  %s608_s8 = sphi %s625_s8, %s11_s8   ;;  %s604_s7 = sphi %s623_s7, %s1017_s7   ;;  %s600_s6 = sphi %s621_s6, %s1016_s6  }
   0x3   : > { %p25_p1 = scmp.ge.s32.totalorder %s23_s9, 2  ;;  %p109_p2 = scmp.lt.s32.totalorder %s608_s8, 3 }
   0x5   : > { %s1019_s9 = smov (%p25_p1, %s23_s9), 0  ;;  %p110_p3 = pnand %p520_p0, %p109_p2 }
   0x6   : > { %p140_p4 = scmp.lt.s32.totalorder (!%p110_p3), %s600_s6, 1  ;;  %s610_s14 = smov (!%p110_p3), 4   ;;  %vm321_vm0 = vcmask (!%p110_p3), 31744   ;;  %vm354_vm1 = vcmask (!%p110_p3), 64512  }
   0x7   : > { %113 = sbr.rel (%p110_p3) target bundleno = 196 (0xc4), region = 24 }
   0xe   : > { %s1021_s6 = smov (!%p140_p4, %s600_s6), 1 }
   0xf   : > { %s559_s10 = sshll.u32 %s1021_s6, 8  ;;  %s560_s15 = sshll.u32 %s1021_s6, 9 }
  0x10   : > { %s645_s13 = scalar_lea.vmem %s1014_s0, %s559_s10  ;;  %s811_s18 = scalar_lea.vmem %s1015_s1, %s560_s15 }
  0x11   : > { %v648_v0 = vld [vmem:[%s645_s13 + $0x10] sm:$0xff]  ;;  %v651_v1 = vld [vmem:[%s645_s13] sm:$0xff]  ;;  %v658_v2 = vld [vmem:[%s645_s13 + $0x18] sm:$0xff] }
  0x12   : > { %229 = vrot.lane.b32.xlu1 %v648_v0, %s610_s14  ;;  %225 = vrot.lane.b32.xlu0 %v651_v1, %s610_s14  ;;  %v661_v3 = vld [vmem:[%s645_s13 + $0x8] sm:$0xff]  ;;  %v671_v5 = vld [vmem:[%s645_s13 + $0x20] sm:$0xff] }
  0x13   : > { %v668_v4 = vld [vmem:[%s645_s13 + $0x28] sm:$0xff]  ;;  %v678_v6 = vld [vmem:[%s645_s13 + $0x38] sm:$0xff]  ;;  %v681_v7 = vld [vmem:[%s645_s13 + $0x30] sm:$0xff] }
  0x14   : > { %v688_v8 = vld [vmem:[%s645_s13 + $0x48] sm:$0xff]  ;;  %v691_v9 = vld [vmem:[%s645_s13 + $0x40] sm:$0xff]  ;;  %v698_v10 = vld [vmem:[%s645_s13 + $0x58] sm:$0xff] }
  0x15   : > { %v701_v11 = vld [vmem:[%s645_s13 + $0x50] sm:$0xff]  ;;  %v708_v12 = vld [vmem:[%s645_s13 + $0x68] sm:$0xff]  ;;  %v711_v13 = vld [vmem:[%s645_s13 + $0x60] sm:$0xff] }
  0x16   : > { %231 = vrot.lane.b32.xlu1 %v658_v2, %s610_s14  ;;  %227 = vrot.lane.b32.xlu0 %v661_v3, %s610_s14  ;;  %v718_v14 = vld [vmem:[%s645_s13 + $0x78] sm:$0xff]  ;;  %v721_v15 = vld [vmem:[%s645_s13 + $0x70] sm:$0xff] }
  0x17   : > { %v728_v16 = vld [vmem:[%s645_s13 + $0x88] sm:$0xff]  ;;  %v731_v17 = vld [vmem:[%s645_s13 + $0x80] sm:$0xff]  ;;  %v738_v18 = vld [vmem:[%s645_s13 + $0x98] sm:$0xff] }
  0x18   : > { %v741_v19 = vld [vmem:[%s645_s13 + $0x90] sm:$0xff]  ;;  %v748_v20 = vld [vmem:[%s645_s13 + $0xa8] sm:$0xff]  ;;  %v751_v21 = vld [vmem:[%s645_s13 + $0xa0] sm:$0xff] }
  0x19   : > { %v758_v22 = vld [vmem:[%s645_s13 + $0xb8] sm:$0xff]  ;;  %v761_v23 = vld [vmem:[%s645_s13 + $0xb0] sm:$0xff]  ;;  %v768_v24 = vld [vmem:[%s645_s13 + $0xc8] sm:$0xff] }
  0x1a   : > { %235 = vrot.lane.b32.xlu1 %v668_v4, %s610_s14  ;;  %233 = vrot.lane.b32.xlu0 %v671_v5, %s610_s14  ;;  %v771_v25 = vld [vmem:[%s645_s13 + $0xc0] sm:$0xff]  ;;  %v778_v26 = vld [vmem:[%s645_s13 + $0xd8] sm:$0xff] }
  0x1b   : > { %v781_v27 = vld [vmem:[%s645_s13 + $0xd0] sm:$0xff]  ;;  %v788_v28 = vld [vmem:[%s645_s13 + $0xe8] sm:$0xff]  ;;  %v791_v29 = vld [vmem:[%s645_s13 + $0xe0] sm:$0xff] }
  0x1c   : > { %v798_v30 = vld [vmem:[%s645_s13 + $0xf8] sm:$0xff]  ;;  %v801_v31 = vld [vmem:[%s645_s13 + $0xf0] sm:$0xff] }
  0x1e   : > { %239 = vrot.lane.b32.xlu1 %v678_v6, %s610_s14  ;;  %237 = vrot.lane.b32.xlu0 %v681_v7, %s610_s14 }
  0x22   : > { %243 = vrot.lane.b32.xlu1 %v688_v8, %s610_s14  ;;  %241 = vrot.lane.b32.xlu0 %v691_v9, %s610_s14 }
  0x26   : > { %247 = vrot.lane.b32.xlu1 %v698_v10, %s610_s14  ;;  %245 = vrot.lane.b32.xlu0 %v701_v11, %s610_s14 }
  0x2a   : > { %251 = vrot.lane.b32.xlu1 %v708_v12, %s610_s14  ;;  %249 = vrot.lane.b32.xlu0 %v711_v13, %s610_s14 }
  0x2e   : > { %255 = vrot.lane.b32.xlu1 %v718_v14, %s610_s14  ;;  %253 = vrot.lane.b32.xlu0 %v721_v15, %s610_s14 }
  0x32   : > { %259 = vrot.lane.b32.xlu1 %v728_v16, %s610_s14  ;;  %257 = vrot.lane.b32.xlu0 %v731_v17, %s610_s14 }
  0x36   : > { %263 = vrot.lane.b32.xlu1 %v738_v18, %s610_s14  ;;  %261 = vrot.lane.b32.xlu0 %v741_v19, %s610_s14 }
  0x3a   : > { %267 = vrot.lane.b32.xlu1 %v748_v20, %s610_s14  ;;  %265 = vrot.lane.b32.xlu0 %v751_v21, %s610_s14 }
  0x3e   : > { %271 = vrot.lane.b32.xlu1 %v758_v22, %s610_s14  ;;  %269 = vrot.lane.b32.xlu0 %v761_v23, %s610_s14 }
  0x42   : > { %275 = vrot.lane.b32.xlu1 %v768_v24, %s610_s14  ;;  %273 = vrot.lane.b32.xlu0 %v771_v25, %s610_s14 }
  0x46   : > { %279 = vrot.lane.b32.xlu1 %v778_v26, %s610_s14  ;;  %277 = vrot.lane.b32.xlu0 %v781_v27, %s610_s14 }
  0x4a   : > { %283 = vrot.lane.b32.xlu1 %v788_v28, %s610_s14  ;;  %281 = vrot.lane.b32.xlu0 %v791_v29, %s610_s14 }
  0x4e   : > { %287 = vrot.lane.b32.xlu1 %v798_v30, %s610_s14  ;;  %285 = vrot.lane.b32.xlu0 %v801_v31, %s610_s14 }
  0x84   : > { %v230_v32 = vpop.permute.xlu1 %229  ;;  %v226_v33 = vpop.permute.xlu0 %225 }
  0x85   : > { %v324_v34 = vsel %vm321_vm0, %v648_v0, %v230_v32  ;;  %v322_v35 = vsel %vm321_vm0, %v651_v1, %v226_v33 }
  0x86   : > { %357 = vst.msk [vmem:[%s811_s18 + $0x20] sm:$0xff] %vm354_vm1, %v324_v34  ;;  %527 = vst.msk [vmem:[%s811_s18 + $0x30] sm:$0xff] %vm354_vm1, %v324_v34 }
  0x87   : > { %355 = vst.msk [vmem:[%s811_s18] sm:$0xff] %vm354_vm1, %v322_v35  ;;  %525 = vst.msk [vmem:[%s811_s18 + $0x10] sm:$0xff] %vm354_vm1, %v322_v35 }
  0x88   : > { %v232_v36 = vpop.permute.xlu1 %231  ;;  %v228_v37 = vpop.permute.xlu0 %227 }
  0x89   : > { %v325_v38 = vsel %vm321_vm0, %v658_v2, %v232_v36  ;;  %v323_v39 = vsel %vm321_vm0, %v661_v3, %v228_v37 }
  0x8a   : > { %358 = vst.msk [vmem:[%s811_s18 + $0x28] sm:$0xff] %vm354_vm1, %v325_v38  ;;  %528 = vst.msk [vmem:[%s811_s18 + $0x38] sm:$0xff] %vm354_vm1, %v325_v38 }
  0x8b   : > { %356 = vst.msk [vmem:[%s811_s18 + $0x8] sm:$0xff] %vm354_vm1, %v323_v39  ;;  %526 = vst.msk [vmem:[%s811_s18 + $0x18] sm:$0xff] %vm354_vm1, %v323_v39 }
  0x8c   : > { %v236_v40 = vpop.permute.xlu1 %235  ;;  %v234_v41 = vpop.permute.xlu0 %233 }
  0x8d   : > { %v327_v42 = vsel %vm321_vm0, %v668_v4, %v236_v40  ;;  %v326_v43 = vsel %vm321_vm0, %v671_v5, %v234_v41 }
  0x8e   : > { %360 = vst.msk [vmem:[%s811_s18 + $0x48] sm:$0xff] %vm354_vm1, %v327_v42  ;;  %530 = vst.msk [vmem:[%s811_s18 + $0x58] sm:$0xff] %vm354_vm1, %v327_v42 }
  0x8f   : > { %359 = vst.msk [vmem:[%s811_s18 + $0x40] sm:$0xff] %vm354_vm1, %v326_v43  ;;  %529 = vst.msk [vmem:[%s811_s18 + $0x50] sm:$0xff] %vm354_vm1, %v326_v43 }
  0x90   : > { %v240_v44 = vpop.permute.xlu1 %239  ;;  %v238_v45 = vpop.permute.xlu0 %237 }
  0x91   : > { %v329_v46 = vsel %vm321_vm0, %v678_v6, %v240_v44  ;;  %v328_v47 = vsel %vm321_vm0, %v681_v7, %v238_v45 }
  0x92   : > { %362 = vst.msk [vmem:[%s811_s18 + $0x68] sm:$0xff] %vm354_vm1, %v329_v46  ;;  %532 = vst.msk [vmem:[%s811_s18 + $0x78] sm:$0xff] %vm354_vm1, %v329_v46 }
  0x93   : > { %361 = vst.msk [vmem:[%s811_s18 + $0x60] sm:$0xff] %vm354_vm1, %v328_v47  ;;  %531 = vst.msk [vmem:[%s811_s18 + $0x70] sm:$0xff] %vm354_vm1, %v328_v47 }
  0x94   : > { %v244_v48 = vpop.permute.xlu1 %243  ;;  %v242_v49 = vpop.permute.xlu0 %241 }
  0x95   : > { %v331_v50 = vsel %vm321_vm0, %v688_v8, %v244_v48  ;;  %v330_v51 = vsel %vm321_vm0, %v691_v9, %v242_v49 }
  0x96   : > { %364 = vst.msk [vmem:[%s811_s18 + $0x88] sm:$0xff] %vm354_vm1, %v331_v50  ;;  %534 = vst.msk [vmem:[%s811_s18 + $0x98] sm:$0xff] %vm354_vm1, %v331_v50 }
  0x97   : > { %363 = vst.msk [vmem:[%s811_s18 + $0x80] sm:$0xff] %vm354_vm1, %v330_v51  ;;  %533 = vst.msk [vmem:[%s811_s18 + $0x90] sm:$0xff] %vm354_vm1, %v330_v51 }
  0x98   : > { %v248_v52 = vpop.permute.xlu1 %247  ;;  %v246_v53 = vpop.permute.xlu0 %245 }
  0x99   : > { %v333_v54 = vsel %vm321_vm0, %v698_v10, %v248_v52  ;;  %v332_v55 = vsel %vm321_vm0, %v701_v11, %v246_v53 }
  0x9a   : > { %366 = vst.msk [vmem:[%s811_s18 + $0xa8] sm:$0xff] %vm354_vm1, %v333_v54  ;;  %536 = vst.msk [vmem:[%s811_s18 + $0xb8] sm:$0xff] %vm354_vm1, %v333_v54 }
  0x9b   : > { %365 = vst.msk [vmem:[%s811_s18 + $0xa0] sm:$0xff] %vm354_vm1, %v332_v55  ;;  %535 = vst.msk [vmem:[%s811_s18 + $0xb0] sm:$0xff] %vm354_vm1, %v332_v55 }
  0x9c   : > { %v252_v56 = vpop.permute.xlu1 %251  ;;  %v250_v57 = vpop.permute.xlu0 %249 }
  0x9d   : > { %v335_v58 = vsel %vm321_vm0, %v708_v12, %v252_v56  ;;  %v334_v59 = vsel %vm321_vm0, %v711_v13, %v250_v57 }
  0x9e   : > { %368 = vst.msk [vmem:[%s811_s18 + $0xc8] sm:$0xff] %vm354_vm1, %v335_v58  ;;  %538 = vst.msk [vmem:[%s811_s18 + $0xd8] sm:$0xff] %vm354_vm1, %v335_v58 }
  0x9f   : > { %367 = vst.msk [vmem:[%s811_s18 + $0xc0] sm:$0xff] %vm354_vm1, %v334_v59  ;;  %537 = vst.msk [vmem:[%s811_s18 + $0xd0] sm:$0xff] %vm354_vm1, %v334_v59 }
  0xa0   : > { %v256_v60 = vpop.permute.xlu1 %255  ;;  %v254_v61 = vpop.permute.xlu0 %253 }
  0xa1   : > { %v337_v62 = vsel %vm321_vm0, %v718_v14, %v256_v60  ;;  %v336_v63 = vsel %vm321_vm0, %v721_v15, %v254_v61 }
  0xa2   : > { %370 = vst.msk [vmem:[%s811_s18 + $0xe8] sm:$0xff] %vm354_vm1, %v337_v62  ;;  %540 = vst.msk [vmem:[%s811_s18 + $0xf8] sm:$0xff] %vm354_vm1, %v337_v62 }
  0xa3   : > { %369 = vst.msk [vmem:[%s811_s18 + $0xe0] sm:$0xff] %vm354_vm1, %v336_v63  ;;  %539 = vst.msk [vmem:[%s811_s18 + $0xf0] sm:$0xff] %vm354_vm1, %v336_v63 }
  0xa4   : > { %v260_v0 = vpop.permute.xlu1 %259  ;;  %v258_v1 = vpop.permute.xlu0 %257 }
  0xa5   : > { %v339_v2 = vsel %vm321_vm0, %v728_v16, %v260_v0  ;;  %v338_v3 = vsel %vm321_vm0, %v731_v17, %v258_v1 }
  0xa6   : > { %372 = vst.msk [vmem:[%s811_s18 + $0x108] sm:$0xff] %vm354_vm1, %v339_v2  ;;  %542 = vst.msk [vmem:[%s811_s18 + $0x118] sm:$0xff] %vm354_vm1, %v339_v2 }
  0xa7   : > { %371 = vst.msk [vmem:[%s811_s18 + $0x100] sm:$0xff] %vm354_vm1, %v338_v3  ;;  %541 = vst.msk [vmem:[%s811_s18 + $0x110] sm:$0xff] %vm354_vm1, %v338_v3 }
  0xa8   : > { %v264_v4 = vpop.permute.xlu1 %263  ;;  %v262_v5 = vpop.permute.xlu0 %261 }
  0xa9   : > { %v341_v6 = vsel %vm321_vm0, %v738_v18, %v264_v4  ;;  %v340_v7 = vsel %vm321_vm0, %v741_v19, %v262_v5 }
  0xaa   : > { %374 = vst.msk [vmem:[%s811_s18 + $0x128] sm:$0xff] %vm354_vm1, %v341_v6  ;;  %544 = vst.msk [vmem:[%s811_s18 + $0x138] sm:$0xff] %vm354_vm1, %v341_v6 }
  0xab   : > { %373 = vst.msk [vmem:[%s811_s18 + $0x120] sm:$0xff] %vm354_vm1, %v340_v7  ;;  %543 = vst.msk [vmem:[%s811_s18 + $0x130] sm:$0xff] %vm354_vm1, %v340_v7 }
  0xac   : > { %v268_v8 = vpop.permute.xlu1 %267  ;;  %v266_v9 = vpop.permute.xlu0 %265 }
  0xad   : > { %v343_v10 = vsel %vm321_vm0, %v748_v20, %v268_v8  ;;  %v342_v11 = vsel %vm321_vm0, %v751_v21, %v266_v9 }
  0xae   : > { %376 = vst.msk [vmem:[%s811_s18 + $0x148] sm:$0xff] %vm354_vm1, %v343_v10  ;;  %546 = vst.msk [vmem:[%s811_s18 + $0x158] sm:$0xff] %vm354_vm1, %v343_v10 }
  0xaf   : > { %375 = vst.msk [vmem:[%s811_s18 + $0x140] sm:$0xff] %vm354_vm1, %v342_v11  ;;  %545 = vst.msk [vmem:[%s811_s18 + $0x150] sm:$0xff] %vm354_vm1, %v342_v11 }
  0xb0   : > { %v272_v12 = vpop.permute.xlu1 %271  ;;  %v270_v13 = vpop.permute.xlu0 %269 }
  0xb1   : > { %v345_v14 = vsel %vm321_vm0, %v758_v22, %v272_v12  ;;  %v344_v15 = vsel %vm321_vm0, %v761_v23, %v270_v13 }
  0xb2   : > { %378 = vst.msk [vmem:[%s811_s18 + $0x168] sm:$0xff] %vm354_vm1, %v345_v14  ;;  %548 = vst.msk [vmem:[%s811_s18 + $0x178] sm:$0xff] %vm354_vm1, %v345_v14 }
  0xb3   : > { %377 = vst.msk [vmem:[%s811_s18 + $0x160] sm:$0xff] %vm354_vm1, %v344_v15  ;;  %547 = vst.msk [vmem:[%s811_s18 + $0x170] sm:$0xff] %vm354_vm1, %v344_v15 }
  0xb4   : > { %v276_v16 = vpop.permute.xlu1 %275  ;;  %v274_v17 = vpop.permute.xlu0 %273 }
  0xb5   : > { %v347_v18 = vsel %vm321_vm0, %v768_v24, %v276_v16  ;;  %v346_v19 = vsel %vm321_vm0, %v771_v25, %v274_v17 }
  0xb6   : > { %380 = vst.msk [vmem:[%s811_s18 + $0x188] sm:$0xff] %vm354_vm1, %v347_v18  ;;  %550 = vst.msk [vmem:[%s811_s18 + $0x198] sm:$0xff] %vm354_vm1, %v347_v18 }
  0xb7   : > { %379 = vst.msk [vmem:[%s811_s18 + $0x180] sm:$0xff] %vm354_vm1, %v346_v19  ;;  %549 = vst.msk [vmem:[%s811_s18 + $0x190] sm:$0xff] %vm354_vm1, %v346_v19 }
  0xb8   : > { %v280_v20 = vpop.permute.xlu1 %279  ;;  %v278_v21 = vpop.permute.xlu0 %277 }
  0xb9   : > { %v349_v22 = vsel %vm321_vm0, %v778_v26, %v280_v20  ;;  %v348_v23 = vsel %vm321_vm0, %v781_v27, %v278_v21 }
  0xba   : > { %382 = vst.msk [vmem:[%s811_s18 + $0x1a8] sm:$0xff] %vm354_vm1, %v349_v22  ;;  %552 = vst.msk [vmem:[%s811_s18 + $0x1b8] sm:$0xff] %vm354_vm1, %v349_v22 }
  0xbb   : > { %381 = vst.msk [vmem:[%s811_s18 + $0x1a0] sm:$0xff] %vm354_vm1, %v348_v23  ;;  %551 = vst.msk [vmem:[%s811_s18 + $0x1b0] sm:$0xff] %vm354_vm1, %v348_v23 }
  0xbc   : > { %v284_v24 = vpop.permute.xlu1 %283  ;;  %v282_v25 = vpop.permute.xlu0 %281 }
  0xbd   : > { %v351_v26 = vsel %vm321_vm0, %v788_v28, %v284_v24  ;;  %v350_v27 = vsel %vm321_vm0, %v791_v29, %v282_v25 }
  0xbe   : > { %384 = vst.msk [vmem:[%s811_s18 + $0x1c8] sm:$0xff] %vm354_vm1, %v351_v26  ;;  %554 = vst.msk [vmem:[%s811_s18 + $0x1d8] sm:$0xff] %vm354_vm1, %v351_v26 }
  0xbf   : > { %383 = vst.msk [vmem:[%s811_s18 + $0x1c0] sm:$0xff] %vm354_vm1, %v350_v27  ;;  %553 = vst.msk [vmem:[%s811_s18 + $0x1d0] sm:$0xff] %vm354_vm1, %v350_v27 }
  0xc0   : > { %v288_v32 = vpop.permute.xlu1 %287  ;;  %v286_v33 = vpop.permute.xlu0 %285 }
  0xc1   : > { %v353_v34 = vsel %vm321_vm0, %v798_v30, %v288_v32  ;;  %v352_v35 = vsel %vm321_vm0, %v801_v31, %v286_v33 }
  0xc2   : > { %386 = vst.msk [vmem:[%s811_s18 + $0x1e8] sm:$0xff] %vm354_vm1, %v353_v34  ;;  %556 = vst.msk [vmem:[%s811_s18 + $0x1f8] sm:$0xff] %vm354_vm1, %v353_v34 }
  0xc3   : > { %385 = vst.msk [vmem:[%s811_s18 + $0x1e0] sm:$0xff] %vm354_vm1, %v352_v35  ;;  %555 = vst.msk [vmem:[%s811_s18 + $0x1f0] sm:$0xff] %vm354_vm1, %v352_v35 }
  0xc4 PF: > { %s11_s8 = sadd.s32 1, %s608_s8   ;;  %s1016_s6 = smov %s604_s7 }
  0xc5   : > { %p8_p5 = scmp.ge.s32.totalorder %s11_s8, 4   ;;  %s1017_s7 = smov %s1019_s9 }
  0xc7   :  { %10 = sbr.rel (!%p8_p5) target bundleno = 2 (0x2), region = 55 }

</bundles_post_ra>
